<compile_context>
chip_gen: v6e
topology: v6e:2x2x1
jax: 0.10.0
libtpu: 0.0.40
codegen_flags: <defaults>
</compile_context>

<pallas_src>
import functools

import jax
import jax.numpy as jnp
from jax import lax
from jax.experimental import pallas as pl
from jax.experimental.pallas import tpu as pltpu


def _i32(v):
    """Python int -> int32 constant with 2^32 wraparound (avoids overflow errors)."""
    v &= 0xFFFFFFFF
    if v >= 1 << 31:
        v -= 1 << 32
    return jnp.int32(v)


def _dropout_scale(g_row0, tile_len, dim, seed, dropout_p):
    """(tile_len, dim) f32 multiplier: 1/(1-p) where kept, 0.0 where dropped.

    Counter-based integer hash built from plain jnp ops (lowers on Mosaic and in
    interpret mode).  Shifted values are masked so int32 arithmetic shifts do not
    sign-extend into the hash.
    """
    row = lax.broadcasted_iota(jnp.int32, (tile_len, dim), 0) + g_row0
    col = lax.broadcasted_iota(jnp.int32, (tile_len, dim), 1)
    h = row * _i32(0x9E3779B9) + col * _i32(0x0019660D) + _i32(seed * 0x3C6EF35F)
    h = (h ^ ((h >> 16) & _i32(0xFFFF))) * _i32(0x045D9F3B)
    h = (h ^ ((h >> 16) & _i32(0xFFFF))) * _i32(0x045D9F3B)
    h = (h ^ ((h >> 16) & _i32(0xFFFF))) & _i32(0x00FFFFFF)   # uniform-ish 24-bit
    thresh = _i32(int(float(dropout_p) * float(1 << 24)))
    keep = (h >= thresh).astype(jnp.float32)
    return keep * jnp.float32(1.0 / (1.0 - float(dropout_p)))


def _onehot_kernel(ids_ref, w_ref, p_ref, o_ref, *, dropout_p, training,
                   tile_len, dim, padded_len, seed):
    # ids_ref: (1, TL, 1) int32 token ids for this tile (VMEM)
    # w_ref  : (Vp, D)    word table, vocab padded to a multiple of 128 (VMEM)
    # p_ref  : (TL, D)    positional-embedding tile
    # o_ref  : (1, TL, D) output tile
    lt = pl.program_id(0)     # sequence-tile index (outer grid axis)
    b = pl.program_id(1)      # batch index (inner grid axis)
    vp = w_ref.shape[0]

    # One-hot(ids) @ table on the MXU: a single pipelined matmul instead of TL
    # serialized 1-sublane row copies.  Out-of-range ids match no column and yield a
    # zero word row (PyTorch's nn.Embedding would raise; validate ids upstream).
    onehot = (ids_ref[0] == lax.broadcasted_iota(jnp.int32, (tile_len, vp), 1)
              ).astype(w_ref.dtype)
    emb = jnp.dot(onehot, w_ref[...],
                  preferred_element_type=jnp.float32,
                  precision=lax.Precision.HIGHEST)
    emb = emb + p_ref[...].astype(jnp.float32)

    if training and dropout_p > 0.0:
        g_row0 = b * padded_len + lt * tile_len
        emb = emb * _dropout_scale(g_row0, tile_len, dim, seed, dropout_p)

    o_ref[0] = emb.astype(o_ref.dtype)


def _gather_kernel(ids_ref, w_ref, p_ref, o_ref, *, dropout_p, training,
                   tile_len, dim, padded_len, seed, vocab):
    # ids_ref: (B, Lp) int32 token ids, whole array resident in SMEM
    #          TODO(synk): tile ids per (b, l) block to bound SMEM at very large B*L.
    # w_ref  : (V, D)  word table (VMEM resident)
    # p_ref  : (TL, D) positional-embedding tile
    # o_ref  : (1, TL, D) output tile
    lt = pl.program_id(0)
    b = pl.program_id(1)
    row0 = lt * tile_len

    def gather_row(i, carry):
        tok = ids_ref[b, row0 + i]                 # cheap SMEM scalar read
        tok = jnp.clip(tok, 0, vocab - 1)          # nn.Embedding would raise on OOB
        # Fused gather + positional add, written straight into the output tile.
        row = w_ref[pl.ds(tok, 1), :] + p_ref[pl.ds(i, 1), :]
        o_ref[0, pl.ds(i, 1), :] = row.astype(o_ref.dtype)
        return carry

    # Partial unroll so the LLO scheduler can overlap independent load->store chains.
    if tile_len <= 32:
        unroll = tile_len
    elif tile_len % 8 == 0:
        unroll = 8
    else:
        unroll = 1
    lax.fori_loop(0, tile_len, gather_row, 0, unroll=unroll)

    if training and dropout_p > 0.0:
        g_row0 = b * padded_len + row0
        scale = _dropout_scale(g_row0, tile_len, dim, seed, dropout_p)
        o_ref[0] = (o_ref[0].astype(jnp.float32) * scale).astype(o_ref.dtype)


_ONEHOT_MAX_VOCAB = 512     # one-hot MXU path up to this vocab size
_MAX_TILE_LEN = 1024        # sequence tile cap (keeps per-step VMEM bounded)


def position_embedding(x, word_table, pos_table, *, dropout_p=0.1,
                       training=False, seed=0):
    """x: (B, L) int tokens; word_table: (V, D); pos_table: (max_len, D) -> (B, L, D)."""
    B, L = x.shape
    V, D = word_table.shape
    assert L <= pos_table.shape[0], "sequence length exceeds max_len"
    out_dtype = word_table.dtype
    itemsize = jnp.dtype(out_dtype).itemsize

    # --- sequence tiling: pad ragged / long L instead of one unbounded tile ---
    if L <= _MAX_TILE_LEN:
        tile_len, padded_len = L, L
    else:
        tile_len = _MAX_TILE_LEN
        padded_len = int(pl.cdiv(L, tile_len)) * tile_len
    n_lt = padded_len // tile_len

    ids = x.astype(jnp.int32)
    pos = pos_table[:L].astype(out_dtype)
    if padded_len != L:
        ids = jnp.pad(ids, ((0, 0), (0, padded_len - L)))
        pos = jnp.pad(pos, ((0, padded_len - L), (0, 0)))

    use_onehot = V <= _ONEHOT_MAX_VOCAB

    # Grid (seq_tiles, batch), batch innermost: the pos tile (indexed by the outer
    # axis only) stays VMEM-resident across the batch loop; both axes parallel.
    grid = (n_lt, B)

    common = dict(dropout_p=float(dropout_p), training=bool(training),
                  tile_len=tile_len, dim=D, padded_len=padded_len, seed=int(seed))

    if use_onehot:
        vp = max(128, int(pl.cdiv(V, 128)) * 128)           # lane-dense padded vocab
        wt = word_table if vp == V else jnp.pad(word_table, ((0, vp - V), (0, 0)))
        kernel = functools.partial(_onehot_kernel, **common)
        in_specs = [
            pl.BlockSpec((1, tile_len, 1), lambda l, b: (b, l, 0)),
            pl.BlockSpec((vp, D), lambda l, b: (0, 0)),      # table, fetched once
            pl.BlockSpec((tile_len, D), lambda l, b: (l, 0)),
        ]
        args = (ids[..., None], wt, pos)
        table_bytes = vp * D * itemsize
        onehot_bytes = tile_len * vp * 4
    else:
        kernel = functools.partial(_gather_kernel, vocab=V, **common)
        in_specs = [
            pl.BlockSpec(memory_space=pltpu.MemorySpace.SMEM),  # ids as SMEM scalars
            # TODO(synk): for V*D*4 beyond ~40 MiB (v7x: 64 MiB VMEM), keep the table
            # in HBM (memory_space=pl.ANY) and ring-DMA only the referenced rows.
            pl.BlockSpec((V, D), lambda l, b: (0, 0)),
            pl.BlockSpec((tile_len, D), lambda l, b: (l, 0)),
        ]
        args = (ids, word_table, pos)
        table_bytes = V * D * itemsize
        onehot_bytes = 0

    tile_bytes = tile_len * D * itemsize
    # table (double-buffered by default even though its block index is constant),
    # double-buffered pos + out tiles, one-hot temporary, plus headroom.
    vmem_need = 2 * table_bytes + 4 * tile_bytes + onehot_bytes + (4 << 20)
    vmem_limit = int(min(64 << 20, max(16 << 20, vmem_need)))

    out = pl.pallas_call(
        kernel,
        out_shape=jax.ShapeDtypeStruct((B, padded_len, D), out_dtype),
        grid=grid,
        in_specs=in_specs,
        out_specs=pl.BlockSpec((1, tile_len, D), lambda l, b: (b, l, 0)),
        compiler_params=pltpu.CompilerParams(
            dimension_semantics=("parallel", "parallel"),
            vmem_limit_bytes=vmem_limit),
    )(*args)

    return out[:, :L, :] if padded_len != L else out


if __name__ == "__main__":
    # Small shapes consistent with PositionEmbedding(n_emb, dim, max_len).
    # D=128 keeps output stores lane-dense (module default is dim=256).
    n_emb, dim, max_len = 64, 128, 16
    B, L = 2, 8
    p = 0.1

    key = jax.random.PRNGKey(0)
    k_tok, k_w, k_p, k_w2, k_tok2 = jax.random.split(key, 5)

    # nn.Embedding default init is N(0, 1).
    word_table = jax.random.normal(k_w, (n_emb, dim), dtype=jnp.float32)
    pos_table = jax.random.normal(k_p, (max_len, dim), dtype=jnp.float32)
    x = jax.random.randint(k_tok, (B, L), 0, n_emb, dtype=jnp.int32)
    ref = word_table[x] + pos_table[:L][None, :, :]

    # --- eval mode, small vocab -> one-hot MXU path ---
    out = position_embedding(x, word_table, pos_table, dropout_p=p, training=False)
    out = jax.block_until_ready(out)
    assert out.shape == (B, L, dim)
    assert jnp.allclose(out, ref, rtol=1e-4, atol=1e-4), "eval mismatch (one-hot path)"

    # --- training mode: every element is either 0 (dropped) or ref/(1-p) (kept) ---
    out_tr = position_embedding(x, word_table, pos_table, dropout_p=p,
                                training=True, seed=123)
    out_tr = jax.block_until_ready(out_tr)
    scaled = ref / (1.0 - p)
    ok = (jnp.isclose(out_tr, scaled, rtol=1e-4, atol=1e-4)
          | jnp.isclose(out_tr, 0.0, atol=1e-6))
    assert bool(jnp.all(ok)), "training-mode dropout semantics violated"
    n_dropped = int(jnp.sum(out_tr == 0.0))
    assert 0 < n_dropped < out_tr.size, "dropout mask looks degenerate"

    # --- larger vocab -> scalar-driven gather path (exact lookup) ---
    V2 = 640
    word_table2 = jax.random.normal(k_w2, (V2, dim), dtype=jnp.float32)
    x2 = jax.random.randint(k_tok2, (B, L), 0, V2, dtype=jnp.int32)
    out2 = position_embedding(x2, word_table2, pos_table, dropout_p=p, training=False)
    out2 = jax.block_until_ready(out2)
    ref2 = word_table2[x2] + pos_table[:L][None, :, :]
    assert jnp.allclose(out2, ref2, rtol=1e-5, atol=1e-6), "eval mismatch (gather path)"

    print("KERNEL_OK")
</pallas_src>

<mosaic_0001>
module attributes {stable_mosaic.version = 11 : i64} {
  func.func @_onehot_kernel(%arg0: i32, %arg1: i32, %arg2: memref<1x8x1xi32, #tpu.memory_space<vmem>>, %arg3: memref<128x128xf32, #tpu.memory_space<vmem>>, %arg4: memref<8x128xf32, #tpu.memory_space<vmem>>, %arg5: memref<1x8x128xf32, #tpu.memory_space<vmem>>) attributes {dimension_semantics = [#tpu.dimension_semantics<parallel>, #tpu.dimension_semantics<parallel>], iteration_bounds = array<i64: 1, 2>, scalar_prefetch = 0 : i64, scratch_operands = 0 : i64, tpu.core_type = #tpu.core_type<tc>, window_params = [{transform_indices = @transform_0, window_bounds = array<i64: 1, 8, 1>}, {pipeline_mode = #tpu.pipeline_mode<synchronous>, transform_indices = @transform_1, window_bounds = array<i64: 128, 128>}, {transform_indices = @transform_2, window_bounds = array<i64: 8, 128>}, {transform_indices = @transform_3, window_bounds = array<i64: 1, 8, 128>}]} {
    %c0 = arith.constant 0 : index
    %c0_0 = arith.constant 0 : index
    %c0_1 = arith.constant 0 : index
    %0 = vector.load %arg2[%c0, %c0_0, %c0_1] : memref<1x8x1xi32, #tpu.memory_space<vmem>>, vector<1x8x1xi32>
    %1 = vector.shape_cast %0 : vector<1x8x1xi32> to vector<8x1xi32>
    %2 = tpu.iota {dimensions = array<i32: 1>} : vector<8x128xi32>
    %3 = vector.broadcast %1 : vector<8x1xi32> to vector<8x128xi32>
    %4 = arith.cmpi eq, %3, %2 : vector<8x128xi32>
    %5 = arith.extui %4 : vector<8x128xi1> to vector<8x128xi32>
    %6 = arith.sitofp %5 : vector<8x128xi32> to vector<8x128xf32>
    %c0_2 = arith.constant 0 : index
    %c0_3 = arith.constant 0 : index
    %7 = vector.load %arg3[%c0_2, %c0_3] : memref<128x128xf32, #tpu.memory_space<vmem>>, vector<128x128xf32>
    %cst = arith.constant dense<0.000000e+00> : vector<8x128xf32>
    %8 = tpu.matmul %6, %7, %cst {dimension_numbers = #tpu.dot_dimension_numbers<[1], [0], [0], [1], [0, 0, 1, 1], [], []>, precision = #tpu.contract_precision<fp32>} : vector<8x128xf32>, vector<128x128xf32>, vector<8x128xf32> -> vector<8x128xf32>
    %c0_4 = arith.constant 0 : index
    %c0_5 = arith.constant 0 : index
    %9 = vector.load %arg4[%c0_4, %c0_5] : memref<8x128xf32, #tpu.memory_space<vmem>>, vector<8x128xf32>
    %10 = arith.addf %8, %9 : vector<8x128xf32>
    %c0_6 = arith.constant 0 : index
    %c0_7 = arith.constant 0 : index
    %c0_8 = arith.constant 0 : index
    %11 = vector.load %arg5[%c0_6, %c0_7, %c0_8] : memref<1x8x128xf32, #tpu.memory_space<vmem>>, vector<1x8x128xf32>
    %12 = vector.shape_cast %11 : vector<1x8x128xf32> to vector<8x128xf32>
    %13 = vector.shape_cast %10 : vector<8x128xf32> to vector<1x8x128xf32>
    tpu.vector_store %arg5[%c0_6, %c0_7, %c0_8], %13 {strides = array<i32>} : memref<1x8x128xf32, #tpu.memory_space<vmem>>, vector<1x8x128xf32>,
    return
  }
  func.func @transform_0(%arg0: i32, %arg1: i32) -> (i32, i32, i32) {
    %c0_i32 = arith.constant 0 : i32
    %c0_i32_0 = arith.constant 0 : i32
    return %arg1, %arg0, %c0_i32 : i32, i32, i32
  }
  func.func @transform_1(%arg0: i32, %arg1: i32) -> (i32, i32) {
    %c0_i32 = arith.constant 0 : i32
    %c0_i32_0 = arith.constant 0 : i32
    %c0_i32_1 = arith.constant 0 : i32
    return %c0_i32, %c0_i32_0 : i32, i32
  }
  func.func @transform_2(%arg0: i32, %arg1: i32) -> (i32, i32) {
    %c0_i32 = arith.constant 0 : i32
    %c0_i32_0 = arith.constant 0 : i32
    return %arg0, %c0_i32 : i32, i32
  }
  func.func @transform_3(%arg0: i32, %arg1: i32) -> (i32, i32, i32) {
    %c0_i32 = arith.constant 0 : i32
    %c0_i32_0 = arith.constant 0 : i32
    return %arg1, %arg0, %c0_i32 : i32, i32, i32
  }
}

</mosaic_0001>

<bundles_post_ra>
// kernel: tpu_custom_call.1
= control target key start
LH: loop header
LB: loop body
LE: loop exit
PB: predicated region body
PF: predicated region fallthrough
CT: control target
= control target key end

     0   :  { %8 = vsyncpa [#allocation3], 0  ;;  %s2041_s0 = inlined_call_operand.vmem [shape: s32[2,8,1], index: 0, kind: input, shape index: {}]   ;;  %s2042_s1 = inlined_call_operand.hbm [shape: f32[128,128], index: 1, kind: input, shape index: {}]   ;;  %s2043_s2 = inlined_call_operand.vmem [shape: f32[8,128], index: 2, kind: input, shape index: {}]   ;;  %s2044_s3 = inlined_call_operand.hbm [shape: f32[2,8,128], index: 3, kind: output, shape index: {}]  }
   0x1   :  { %9 = vsyncpa [#allocation4], 0 }
   0x2   :  { %11 = vsyncpa [#allocation4 + $0x1], 0  ;;  %s1543_s12 = smov 0   ;;  %s1545_s13 = smov 0  }
   0x3   :  { %s1547_s14 = smov 0   ;;  %s1549_s15 = smov 0  }
   0x4   :  { %s1551_s16 = smov 0   ;;  %s1553_s17 = smov 0  }
   0x5 LB: > { %s1004_s18 = sadd.s32 4294967295, %s1513_s17   ;;  %s1005_s19 = sadd.s32 4294967294, %s1513_s17   ;;  %s1513_s17 = sphi %s1553_s17, %s17_s17   ;;  %s1509_s16 = sphi %s1551_s16, %s2053_s16   ;;  %s1505_s15 = sphi %s1549_s15, %s2052_s15   ;;  %s1501_s14 = sphi %s1547_s14, %s2051_s14   ;;  %s1497_s13 = sphi %s1545_s13, %s2050_s13   ;;  %s1493_s12 = sphi %s1543_s12, %s2049_s12  }
   0x6   : > { %s26_s20 = sadd.s32 1, %s1509_s16  ;;  %s113_s21 = sadd.s32 1, %s1501_s14 }
   0x7   : > { %p27_p0 = scmp.ge.s32.totalorder %s26_s20, 2  ;;  %p123_p1 = scmp.ne.s32.totalorder %s1501_s14, %s1497_s13 }
   0x8   : > { %p124_p2 = scmp.eq.s32.totalorder %s1004_s18, 1  ;;  %p129_p3 = scmp.ne.s32.totalorder %s1497_s13, %s1493_s12 }
   0x9   : > { %s2055_s20 = smov (%p27_p0, %s26_s20), 0  ;;  %p130_p5 = scmp.eq.s32.totalorder %s1005_s19, 1 }
   0xa   : > { %p1583_p4 = por %p124_p2, %p123_p1  ;;  %s108_s23 = ssub.s32 %s1509_s16, %s2055_s20 }
   0xb   : > { %p1006_p6 = scmp.ge.s32.totalorder %s1513_s17, 1  ;;  %p111_p7 = scmp.eq.s32.totalorder %s108_s23, 0 }
   0xc   : > { %p1590_p8 = por %p130_p5, %p129_p3  ;;  %p137_p9 = scmp.lt.s32.totalorder %s1513_s17, 3 }
   0xd   : > { %s1596_s25 = scalar_select %p111_p7, %s1501_s14, %s113_s21  }
   0xe   : > { %p1598_p10 = pnand %p1006_p6, %p137_p9  ;;  %p1602_p11 = scmp.eq.s32.totalorder %s1004_s18, 0 }
   0xf   : > { %s1515_s28 = smov [#allocation2]  }
  0x10   : > { %p1340_p12 = pneg %p1598_p10  ;;  %s149_s29 = sshll.u32 %s1515_s28, 4  ;;  %s150_s29 = int_to_ptr.vmem [resolvable:$true] %s149_s29 }
  0x11   : > { %s1418_s30 = scalar_lea.vmem %s150_s29, 2048  ;;  %p1426_p5 = scmp.lt.s32.totalorder %s150_s29, %s150_s29 }
  0x12   : > { %p1341_p13 = pnand %p1602_p11, %p1340_p12  ;;  %p1419_p1 = scmp.ne.s32.totalorder %s150_s29, %s1418_s30 }
  0x13   : > { %p1427_p6 = scmp.lt.s32.totalorder %s1418_s30, %s1418_s30 }
  0x14   : > { %p1409_p0 = pneg %p1341_p13 }
  0x15   : > { %p1428_p7 = por %p1427_p6, %p1426_p5 }
  0x16   : > { %p1421_p2 = pnand %p1419_p1, %p1409_p0 }
  0x18   : > { %p1422_p3 = pneg %p1421_p2 }
  0x1a   : > { %p1429_p9 = pnand %p1428_p7, %p1422_p3 }
  0x1c   : > { %1432 = shalt.err (!%p1429_p9)
}
  0x1d   : > { %s1516_s4 = smov 128   ;;  %s1517_s5 = smov 8  }
  0x1e   : > { %1343 = dma.hbm_to_vmem [thread:$0]  (!%p1341_p13), %s2042_s1, 2048, %s150_s29, [#allocation3], %s1516_s4, %s1516_s4, %s1517_s5  }
  0x1f   : > { %182 = sbr.rel (%p1598_p10) target bundleno = 454 (0x1c6), region = 32 }
  0x24   : > { %1484 = dma.done.wait (%p1602_p11), [#allocation3], 2048  }
  0x25   : > { %1486 = vsyncadd (%p1602_p11), [#allocation3], 4294965248  ;;  %p212_p12 = scmp.lt.s32.totalorder %s1505_s15, 1  ;;  %v1518_v0 = vmov 0   ;;  %v1519_v1 = vmov 0.0   ;;  %vm1520_vm0 = vmmov 0  }
  0x26   : > { %1406 = vset.pattern.permute.xlu0 %v1518_v0  ;;  %1159 = vmatprep.subr.mxu1 %v1519_v1  ;;  %v247_v3 = vld [vmem:[#allocation2 + $0x78] sm:$0xff]  ;;  %v246_v4 = vld [vmem:[#allocation2 + $0x70] sm:$0xff]  ;;  %v245_v7 = vld [vmem:[#allocation2 + $0x68] sm:$0xff]  ;;  %s209_s23 = sand.u32 1, %s1497_s13   ;;  %s1019_s27 = sshll.u32 %s1505_s15, 7 }
  0x27   : > { %s213_s8 = scalar_select %p212_p12, %s1505_s15, 1  ;;  %1124 = vmatprep.subr.mxu0 %v1519_v1  ;;  %1191 = vmatprep.mubr.msk.f32.mxu1 %vm1520_vm0, %v1519_v1  ;;  %v1630_v5 = vand.u32 4294901760, %v247_v3  ;;  %v1632_v6 = vand.u32 4294901760, %v246_v4  ;;  %v244_v8 = vld [vmem:[#allocation2 + $0x60] sm:$0xff]  ;;  %v243_v9 = vld [vmem:[#allocation2 + $0x58] sm:$0xff]  ;;  %v1634_v10 = vand.u32 4294901760, %v245_v7 }
  0x28   : > { %1156 = vmatprep.mubr.msk.f32.mxu0 %vm1520_vm0, %v1519_v1  ;;  %v1636_v11 = vand.u32 4294901760, %v244_v8  ;;  %v1638_v12 = vand.u32 4294901760, %v243_v9  ;;  %v242_v13 = vld [vmem:[#allocation2 + $0x50] sm:$0xff]  ;;  %v241_v14 = vld [vmem:[#allocation2 + $0x48] sm:$0xff]  ;;  %v240_v15 = vld [vmem:[#allocation2 + $0x40] sm:$0xff]  ;;  %s1012_s26 = sshll.u32 %s209_s23, 3  ;;  %s904_s5 = scalar_lea.hbm %s2044_s3, %s1019_s27 }
  0x29   : > { %s1013_s9 = sshll.u32 %s213_s8, 3  ;;  %v1641_v16 = vsub.f32 %v247_v3, %v1630_v5  ;;  %v1644_v17 = vsub.f32 %v246_v4, %v1632_v6  ;;  %1125 = vmatpush3.msra.mxu0 %v1630_v5  ;;  %v1647_v18 = vand.u32 4294901760, %v242_v13  ;;  %v1649_v19 = vand.u32 4294901760, %v241_v14  ;;  %v239_v36 = vld [vmem:[#allocation2 + $0x38] sm:$0xff]  ;;  %v238_v37 = vld [vmem:[#allocation2 + $0x30] sm:$0xff]  ;;  %v237_v41 = vld [vmem:[#allocation2 + $0x28] sm:$0xff] }
  0x2a   : > { %s218_s18 = scalar_lea.vmem %s2041_s0, %s1013_s9  ;;  %v1652_v20 = vsub.f32 %v245_v7, %v1634_v10  ;;  %v1655_v21 = vsub.f32 %v244_v8, %v1636_v11  ;;  %v1658_v22 = vsub.f32 %v243_v9, %v1638_v12  ;;  %1126 = vmatprep.subr.mxu0 %v1519_v1  ;;  %v1661_v23 = vand.u32 4294901760, %v240_v15  ;;  %v236_v43 = vld [vmem:[#allocation2 + $0x20] sm:$0xff]  ;;  %v235_v51 = vld [vmem:[#allocation2 + $0x18] sm:$0xff]  ;;  %v234_v57 = vld [vmem:[#allocation2 + $0x10] sm:$0xff]  ;;  %s211_s28 = scalar_lea.vmem [#allocation5], %s1012_s26 }
  0x2b   : > { %v223_v2 = vld [vmem:[%s218_s18] sm:$0xff]  ;;  %v343_v24 = vand.u32 4294901760, %v1641_v16  ;;  %v350_v25 = vand.u32 4294901760, %v1644_v17  ;;  %v1666_v26 = vsub.f32 %v242_v13, %v1647_v18  ;;  %1127 = vmatpush3.msra.mxu0 %v1632_v6  ;;  %v1673_v29 = vsub.f32 %v241_v14, %v1649_v19  ;;  %v233_v63 = vld [vmem:[#allocation2 + $0x8] sm:$0xff]  ;;  %s906_s29 = sshll.u32 %s211_s28, 4  ;;  %s892_s6 = scalar_lea.sflag [#allocation4], %s209_s23  ;;  %s907_s29 = int_to_ptr.vmem [resolvable:$true] %s906_s29 }
  0x2c   : > { %227 = vperm.xlu0 %1406, %v223_v2   ;;  %v357_v27 = vand.u32 4294901760, %v1652_v20  ;;  %v364_v28 = vand.u32 4294901760, %v1655_v21  ;;  %1128 = vmatprep.subr.mxu0 %v1519_v1  ;;  %v371_v32 = vand.u32 4294901760, %v1658_v22  ;;  %v1689_v35 = vsub.f32 %v240_v15, %v1661_v23  ;;  %v232_v8 = vld [vmem:[#allocation2] sm:$0xff]  ;;  %s1433_s7 = scalar_lea.vmem %s907_s29, 128  ;;  %s1522_s8 = smov [#allocation5]  }
  0x2d   : > { %v344_v30 = vsub.f32 %v1641_v16, %v343_v24  ;;  %v351_v31 = vsub.f32 %v1644_v17, %v350_v25  ;;  %1129 = vmatpush3.msra.mxu0 %v1634_v10  ;;  %v378_v34 = vand.u32 4294901760, %v1666_v26  ;;  %v385_v42 = vand.u32 4294901760, %v1673_v29  ;;  %p1434_p10 = scmp.ne.s32.totalorder %s907_s29, %s1433_s7  ;;  %s1437_s9 = sshll.u32 %s1522_s8, 4  ;;  %s1438_s9 = int_to_ptr.vmem [resolvable:$false] %s1437_s9 }
  0x2e   : > { %v358_v33 = vsub.f32 %v1652_v20, %v357_v27  ;;  %1130 = vmatprep.subr.mxu0 %v1519_v1  ;;  %v365_v40 = vsub.f32 %v1655_v21, %v364_v28  ;;  %v372_v45 = vsub.f32 %v1658_v22, %v371_v32  ;;  %v1700_v46 = vand.u32 4294901760, %v239_v36  ;;  %s1439_s15 = scalar_lea.vmem %s1438_s9, 256  ;;  %p1440_p0 = scmp.lt.s32.totalorder %s907_s29, %s1438_s9 }
  0x2f   : > { %v345_v38 = vand.u32 4294901760, %v344_v30  ;;  %v352_v39 = vand.u32 4294901760, %v351_v31  ;;  %1131 = vmatpush3.msra.mxu0 %v1636_v11  ;;  %v1703_v47 = vand.u32 4294901760, %v238_v37  ;;  %v379_v48 = vsub.f32 %v1666_v26, %v378_v34  ;;  %p1435_p11 = pnand %p1434_p10, %p1583_p4  ;;  %p1441_p1 = scmp.lt.s32.totalorder %s1439_s15, %s1433_s7 }
  0x30   : > { %1132 = vmatprep.subr.mxu0 %v1519_v1  ;;  %v359_v44 = vand.u32 4294901760, %v358_v33  ;;  %v392_v49 = vand.u32 4294901760, %v1689_v35  ;;  %v1711_v50 = vand.u32 4294901760, %v237_v41  ;;  %v366_v52 = vand.u32 4294901760, %v365_v40 }
  0x31   : > { %1160 = vmatpush3.msra.mxu1 %v345_v38  ;;  %1133 = vmatpush3.msra.mxu0 %v1638_v12  ;;  %v1714_v53 = vsub.f32 %v239_v36, %v1700_v46  ;;  %v1717_v54 = vsub.f32 %v238_v37, %v1703_v47  ;;  %v1720_v55 = vand.u32 4294901760, %v236_v43  ;;  %v386_v56 = vsub.f32 %v1673_v29, %v385_v42  ;;  %p1436_p13 = pneg %p1435_p11  ;;  %p1442_p2 = por %p1441_p1, %p1440_p0 }
  0x32   : > { %1161 = vmatprep.subr.mxu1 %v1519_v1  ;;  %1134 = vmatprep.subr.mxu0 %v1519_v1  ;;  %v373_v58 = vand.u32 4294901760, %v372_v45  ;;  %v1729_v60 = vsub.f32 %v237_v41, %v1711_v50  ;;  %v1732_v61 = vand.u32 4294901760, %v235_v51  ;;  %v393_v62 = vsub.f32 %v1689_v35, %v392_v49 }
  0x33   : > { %1162 = vmatpush3.msra.mxu1 %v352_v39  ;;  %1135 = vmatpush3.msra.mxu0 %v1647_v18  ;;  %v399_v59 = vand.u32 4294901760, %v1714_v53  ;;  %v380_v0 = vand.u32 4294901760, %v379_v48  ;;  %v406_v2 = vand.u32 4294901760, %v1717_v54  ;;  %v1741_v3 = vsub.f32 %v236_v43, %v1720_v55  ;;  %p1443_p3 = pnand %p1442_p2, %p1436_p13 }
  0x34   : > { %1163 = vmatprep.subr.mxu1 %v1519_v1  ;;  %1136 = vmatprep.subr.mxu0 %v1519_v1  ;;  %v1744_v4 = vand.u32 4294901760, %v234_v57  ;;  %v387_v7 = vand.u32 4294901760, %v386_v56  ;;  %v413_v13 = vand.u32 4294901760, %v1729_v60  ;;  %v1753_v14 = vsub.f32 %v235_v51, %v1732_v61 }
  0x35   : > { %1164 = vmatpush3.msra.mxu1 %v359_v44  ;;  %1137 = vmatpush3.msra.mxu0 %v1649_v19  ;;  %v400_v9 = vsub.f32 %v1714_v53, %v399_v59  ;;  %v1756_v15 = vand.u32 4294901760, %v233_v63  ;;  %v394_v30 = vand.u32 4294901760, %v393_v62  ;;  %v407_v31 = vsub.f32 %v1717_v54, %v406_v2 }
  0x36   : > { %1165 = vmatprep.subr.mxu1 %v1519_v1  ;;  %1138 = vmatprep.subr.mxu0 %v1519_v1  ;;  %v420_v33 = vand.u32 4294901760, %v1741_v3  ;;  %v1765_v36 = vsub.f32 %v234_v57, %v1744_v4  ;;  %v1768_v37 = vand.u32 4294901760, %v232_v8  ;;  %v414_v39 = vsub.f32 %v1729_v60, %v413_v13 }
  0x37   : > { %1166 = vmatpush3.msra.mxu1 %v366_v52  ;;  %1139 = vmatpush3.msra.mxu0 %v1661_v23  ;;  %v401_v38 = vand.u32 4294901760, %v400_v9  ;;  %v427_v40 = vand.u32 4294901760, %v1753_v14  ;;  %v1777_v41 = vsub.f32 %v233_v63, %v1756_v15  ;;  %v408_v43 = vand.u32 4294901760, %v407_v31 }
  0x38   : > { %1167 = vmatprep.subr.mxu1 %v1519_v1  ;;  %1140 = vmatprep.subr.mxu0 %v1519_v1  ;;  %v421_v44 = vsub.f32 %v1741_v3, %v420_v33  ;;  %v434_v45 = vand.u32 4294901760, %v1765_v36  ;;  %v1787_v48 = vsub.f32 %v232_v8, %v1768_v37  ;;  %v415_v51 = vand.u32 4294901760, %v414_v39 }
  0x39   : > { %1168 = vmatpush3.msra.mxu1 %v373_v58  ;;  %1141 = vmatpush3.msra.mxu0 %v1700_v46  ;;  %v428_v52 = vsub.f32 %v1753_v14, %v427_v40  ;;  %v441_v56 = vand.u32 4294901760, %v1777_v41  ;;  %v224_v31 = vlaneseq }
  0x3a   : > { %1169 = vmatprep.subr.mxu1 %v1519_v1  ;;  %1142 = vmatprep.subr.mxu0 %v1519_v1  ;;  %v422_v57 = vand.u32 4294901760, %v421_v44  ;;  %v435_v58 = vsub.f32 %v1765_v36, %v434_v45  ;;  %v448_v62 = vand.u32 4294901760, %v1787_v48  ;;  %v1521_v44 = vmov 1.0  }
  0x3b   : > { %1170 = vmatpush3.msra.mxu1 %v380_v0  ;;  %1143 = vmatpush3.msra.mxu0 %v1703_v47  ;;  %v429_v63 = vand.u32 4294901760, %v428_v52  ;;  %v442_v0 = vsub.f32 %v1777_v41, %v441_v56 }
  0x3c   : > { %1171 = vmatprep.subr.mxu1 %v1519_v1  ;;  %1144 = vmatprep.subr.mxu0 %v1519_v1  ;;  %v449_v8 = vsub.f32 %v1787_v48, %v448_v62 }
  0x3d   : > { %1172 = vmatpush3.msra.mxu1 %v387_v7  ;;  %1145 = vmatpush3.msra.mxu0 %v1711_v50  ;;  %v436_v7 = vand.u32 4294901760, %v435_v58  ;;  %v443_v9 = vand.u32 4294901760, %v442_v0 }
  0x3e   : > { %1173 = vmatprep.subr.mxu1 %v1519_v1  ;;  %1146 = vmatprep.subr.mxu0 %v1519_v1 }
  0x3f   : > { %1174 = vmatpush3.msra.mxu1 %v394_v30  ;;  %1147 = vmatpush3.msra.mxu0 %v1720_v55  ;;  %v450_v30 = vand.u32 4294901760, %v449_v8 }
  0x40   : > { %1175 = vmatprep.subr.mxu1 %v1519_v1  ;;  %1148 = vmatprep.subr.mxu0 %v1519_v1 }
  0x41   : > { %1176 = vmatpush3.msra.mxu1 %v401_v38  ;;  %1149 = vmatpush3.msra.mxu0 %v1732_v61  ;;  %v1822_v38 = vand.u32 127, %v224_v31 }
  0x42   : > { %1177 = vmatprep.subr.mxu1 %v1519_v1  ;;  %1150 = vmatprep.subr.mxu0 %v1519_v1 }
  0x43   : > { %1178 = vmatpush3.msra.mxu1 %v408_v43  ;;  %1151 = vmatpush3.msra.mxu0 %v1744_v4 }
  0x44   : > { %1179 = vmatprep.subr.mxu1 %v1519_v1  ;;  %1152 = vmatprep.subr.mxu0 %v1519_v1 }
  0x45   : > { %1180 = vmatpush3.msra.mxu1 %v415_v51  ;;  %1153 = vmatpush3.msra.mxu0 %v1756_v15 }
  0x46   : > { %1181 = vmatprep.subr.mxu1 %v1519_v1  ;;  %1154 = vmatprep.subr.mxu0 %v1519_v1 }
  0x47   : > { %1182 = vmatpush3.msra.mxu1 %v422_v57  ;;  %1155 = vmatpush3.msra.mxu0 %v1768_v37 }
  0x48   : > { %1183 = vmatprep.subr.mxu1 %v1519_v1  ;;  %1194 = vmatprep.subr.mxu0 %v1519_v1 }
  0x49   : > { %1184 = vmatpush3.msra.mxu1 %v429_v63 }
  0x4a   : > { %1185 = vmatprep.subr.mxu1 %v1519_v1 }
  0x4b   : > { %1186 = vmatpush3.msra.mxu1 %v436_v7 }
  0x4c   : > { %1187 = vmatprep.subr.mxu1 %v1519_v1 }
  0x4d   : > { %1188 = vmatpush3.msra.mxu1 %v443_v9 }
  0x4e   : > { %1189 = vmatprep.subr.mxu1 %v1519_v1 }
  0x4f   : > { %1190 = vmatpush3.msra.mxu1 %v450_v30 }
  0x50   : > { %1229 = vmatprep.subr.mxu1 %v1519_v1 }
  0xa7   : > { %v1824_v39 = vpop.permute.xlu0 %227 }
  0xa8   : > { %vm229_vm1 = vcmp.eq.s32.totalorder %v1824_v39, %v1822_v38 }
  0xa9   : > { %v1014_v43 = vsel %vm229_vm1, 1.0, %v1519_v1  ;;  %1192 = vmatmul.mubr.msk.f32.vlgmr.msra.gmra.mxu1 %vm229_vm1, %v1521_v44 }
  0xaa   : > { %v1836_v51 = vsub.f32 %v1014_v43, %v1014_v43  ;;  %1230 = vmatpush3.msra.mxu1 %v1630_v5  ;;  %1261 = vmatprep.mubr.msk.f32.mxu1 %vm1520_vm0, %v1519_v1 }
  0xab   : > { %1231 = vmatprep.subr.mxu1 %v1519_v1 }
  0xac   : > { %1232 = vmatpush3.msra.mxu1 %v1632_v6  ;;  %v332_v52 = vand.u32 4294901760, %v1836_v51 }
  0xad   : > { %1233 = vmatprep.subr.mxu1 %v1519_v1 }
  0xae   : > { %1234 = vmatpush3.msra.mxu1 %v1634_v10  ;;  %v333_v57 = vsub.f32 %v1836_v51, %v332_v52 }
  0xaf   : > { %1235 = vmatprep.subr.mxu1 %v1519_v1 }
  0xb0   : > { %1236 = vmatpush3.msra.mxu1 %v1636_v11  ;;  %v334_v58 = vand.u32 4294901760, %v333_v57 }
  0xb1   : > { %1237 = vmatprep.subr.mxu1 %v1519_v1 }
  0xb2   : > { %1238 = vmatpush3.msra.mxu1 %v1638_v12  ;;  %1157 = vmatmul.mubr.f32.vlgmr.msra.gmra.mxu0 %v334_v58 }
  0xb3   : > { %1195 = vmatpush3.msra.mxu0 %v1641_v16  ;;  %1239 = vmatprep.subr.mxu1 %v1519_v1 }
  0xb4   : > { %1196 = vmatprep.subr.mxu0 %v1519_v1  ;;  %1240 = vmatpush3.msra.mxu1 %v1647_v18 }
  0xb5   : > { %1197 = vmatpush3.msra.mxu0 %v1644_v17  ;;  %1241 = vmatprep.subr.mxu1 %v1519_v1 }
  0xb6   : > { %1198 = vmatprep.subr.mxu0 %v1519_v1  ;;  %1242 = vmatpush3.msra.mxu1 %v1649_v19 }
  0xb7   : > { %1199 = vmatpush3.msra.mxu0 %v1652_v20  ;;  %1243 = vmatprep.subr.mxu1 %v1519_v1 }
  0xb8   : > { %1200 = vmatprep.subr.mxu0 %v1519_v1  ;;  %1244 = vmatpush3.msra.mxu1 %v1661_v23 }
  0xb9   : > { %1201 = vmatpush3.msra.mxu0 %v1655_v21  ;;  %1245 = vmatprep.subr.mxu1 %v1519_v1 }
  0xba   : > { %1202 = vmatprep.subr.mxu0 %v1519_v1  ;;  %1246 = vmatpush3.msra.mxu1 %v1700_v46 }
  0xbb   : > { %1203 = vmatpush3.msra.mxu0 %v1658_v22  ;;  %1247 = vmatprep.subr.mxu1 %v1519_v1 }
  0xbc   : > { %1204 = vmatprep.subr.mxu0 %v1519_v1  ;;  %1248 = vmatpush3.msra.mxu1 %v1703_v47 }
  0xbd   : > { %1205 = vmatpush3.msra.mxu0 %v1666_v26  ;;  %1249 = vmatprep.subr.mxu1 %v1519_v1 }
  0xbe   : > { %1206 = vmatprep.subr.mxu0 %v1519_v1  ;;  %1250 = vmatpush3.msra.mxu1 %v1711_v50 }
  0xbf   : > { %1207 = vmatpush3.msra.mxu0 %v1673_v29  ;;  %1251 = vmatprep.subr.mxu1 %v1519_v1 }
  0xc0   : > { %1208 = vmatprep.subr.mxu0 %v1519_v1  ;;  %1252 = vmatpush3.msra.mxu1 %v1720_v55 }
  0xc1   : > { %1209 = vmatpush3.msra.mxu0 %v1689_v35  ;;  %1253 = vmatprep.subr.mxu1 %v1519_v1 }
  0xc2   : > { %1210 = vmatprep.subr.mxu0 %v1519_v1  ;;  %1254 = vmatpush3.msra.mxu1 %v1732_v61 }
  0xc3   : > { %1211 = vmatpush3.msra.mxu0 %v1714_v53  ;;  %1255 = vmatprep.subr.mxu1 %v1519_v1 }
  0xc4   : > { %1212 = vmatprep.subr.mxu0 %v1519_v1  ;;  %1256 = vmatpush3.msra.mxu1 %v1744_v4 }
  0xc5   : > { %1213 = vmatpush3.msra.mxu0 %v1717_v54  ;;  %1257 = vmatprep.subr.mxu1 %v1519_v1 }
  0xc6   : > { %1214 = vmatprep.subr.mxu0 %v1519_v1  ;;  %1258 = vmatpush3.msra.mxu1 %v1756_v15 }
  0xc7   : > { %1215 = vmatpush3.msra.mxu0 %v1729_v60  ;;  %1259 = vmatprep.subr.mxu1 %v1519_v1 }
  0xc8   : > { %1216 = vmatprep.subr.mxu0 %v1519_v1  ;;  %1260 = vmatpush3.msra.mxu1 %v1768_v37 }
  0xc9   : > { %1217 = vmatpush3.msra.mxu0 %v1741_v3  ;;  %1262 = vmatmul.mubr.f32.vlgmr.msra.gmra.mxu1 %v332_v52 }
  0xca   : > { %1299 = vmatprep.subr.mxu1 %v1519_v1  ;;  %1218 = vmatprep.subr.mxu0 %v1519_v1 }
  0xcb   : > { %1300 = vmatpush3.msra.mxu1 %v1630_v5  ;;  %1219 = vmatpush3.msra.mxu0 %v1753_v14 }
  0xcc   : > { %1301 = vmatprep.subr.mxu1 %v1519_v1  ;;  %1220 = vmatprep.subr.mxu0 %v1519_v1 }
  0xcd   : > { %1302 = vmatpush3.msra.mxu1 %v1632_v6  ;;  %1221 = vmatpush3.msra.mxu0 %v1765_v36 }
  0xce   : > { %1303 = vmatprep.subr.mxu1 %v1519_v1  ;;  %1222 = vmatprep.subr.mxu0 %v1519_v1 }
  0xcf   : > { %1304 = vmatpush3.msra.mxu1 %v1634_v10  ;;  %1223 = vmatpush3.msra.mxu0 %v1777_v41 }
  0xd0   : > { %1305 = vmatprep.subr.mxu1 %v1519_v1  ;;  %1224 = vmatprep.subr.mxu0 %v1519_v1 }
  0xd1   : > { %1306 = vmatpush3.msra.mxu1 %v1636_v11  ;;  %1225 = vmatpush3.msra.mxu0 %v1787_v48 }
  0xd2   : > { %1226 = vmatprep.mubr.msk.f32.mxu0 %vm1520_vm0, %v1519_v1  ;;  %1307 = vmatprep.subr.mxu1 %v1519_v1 }
  0xd3   : > { %1227 = vmatmul.mubr.f32.vlgmr.msra.gmra.mxu0 %v1836_v51  ;;  %1264 = vmatprep.subr.mxu0 %v1519_v1 }
  0xd4   : > { %1308 = vmatpush3.msra.mxu1 %v1638_v12  ;;  %1265 = vmatpush3.msra.mxu0 %v343_v24 }
  0xd5   : > { %1309 = vmatprep.subr.mxu1 %v1519_v1  ;;  %1266 = vmatprep.subr.mxu0 %v1519_v1 }
  0xd6   : > { %1310 = vmatpush3.msra.mxu1 %v1647_v18  ;;  %1267 = vmatpush3.msra.mxu0 %v350_v25 }
  0xd7   : > { %1311 = vmatprep.subr.mxu1 %v1519_v1  ;;  %1268 = vmatprep.subr.mxu0 %v1519_v1 }
  0xd8   : > { %1312 = vmatpush3.msra.mxu1 %v1649_v19  ;;  %1269 = vmatpush3.msra.mxu0 %v357_v27 }
  0xd9   : > { %1313 = vmatprep.subr.mxu1 %v1519_v1  ;;  %1270 = vmatprep.subr.mxu0 %v1519_v1 }
  0xda   : > { %1314 = vmatpush3.msra.mxu1 %v1661_v23  ;;  %1271 = vmatpush3.msra.mxu0 %v364_v28 }
  0xdb   : > { %1315 = vmatprep.subr.mxu1 %v1519_v1  ;;  %1272 = vmatprep.subr.mxu0 %v1519_v1 }
  0xdc   : > { %1316 = vmatpush3.msra.mxu1 %v1700_v46  ;;  %1273 = vmatpush3.msra.mxu0 %v371_v32 }
  0xdd   : > { %1317 = vmatprep.subr.mxu1 %v1519_v1  ;;  %1274 = vmatprep.subr.mxu0 %v1519_v1 }
  0xde   : > { %1318 = vmatpush3.msra.mxu1 %v1703_v47  ;;  %1275 = vmatpush3.msra.mxu0 %v378_v34 }
  0xdf   : > { %1319 = vmatprep.subr.mxu1 %v1519_v1  ;;  %1276 = vmatprep.subr.mxu0 %v1519_v1 }
  0xe0   : > { %1320 = vmatpush3.msra.mxu1 %v1711_v50  ;;  %1277 = vmatpush3.msra.mxu0 %v385_v42 }
  0xe1   : > { %1321 = vmatprep.subr.mxu1 %v1519_v1  ;;  %1278 = vmatprep.subr.mxu0 %v1519_v1 }
  0xe2   : > { %1322 = vmatpush3.msra.mxu1 %v1720_v55  ;;  %1279 = vmatpush3.msra.mxu0 %v392_v49 }
  0xe3   : > { %1323 = vmatprep.subr.mxu1 %v1519_v1  ;;  %1280 = vmatprep.subr.mxu0 %v1519_v1 }
  0xe4   : > { %1324 = vmatpush3.msra.mxu1 %v1732_v61  ;;  %1281 = vmatpush3.msra.mxu0 %v399_v59 }
  0xe5   : > { %1325 = vmatprep.subr.mxu1 %v1519_v1  ;;  %1282 = vmatprep.subr.mxu0 %v1519_v1 }
  0xe6   : > { %1326 = vmatpush3.msra.mxu1 %v1744_v4  ;;  %1283 = vmatpush3.msra.mxu0 %v406_v2 }
  0xe7   : > { %1327 = vmatprep.subr.mxu1 %v1519_v1  ;;  %1284 = vmatprep.subr.mxu0 %v1519_v1 }
  0xe8   : > { %1328 = vmatpush3.msra.mxu1 %v1756_v15  ;;  %1285 = vmatpush3.msra.mxu0 %v413_v13 }
  0xe9   : > { %1329 = vmatprep.subr.mxu1 %v1519_v1  ;;  %1286 = vmatprep.subr.mxu0 %v1519_v1 }
  0xea   : > { %1330 = vmatpush3.msra.mxu1 %v1768_v37  ;;  %1331 = vmatprep.mubr.msk.f32.mxu1 %vm1520_vm0, %v1519_v1 }
  0xeb   : > { %1287 = vmatpush3.msra.mxu0 %v420_v33  ;;  %1332 = vmatmul.mubr.msk.f32.vlgmr.msra.gmra.mxu1 %vm229_vm1, %v1521_v44 }
  0xec   : > { %1288 = vmatprep.subr.mxu0 %v1519_v1  ;;  %1296 = vmatprep.mubr.msk.f32.mxu0 %vm1520_vm0, %v1519_v1 }
  0xed   : > { %1289 = vmatpush3.msra.mxu0 %v427_v40 }
  0xee   : > { %1290 = vmatprep.subr.mxu0 %v1519_v1 }
  0xef   : > { %1291 = vmatpush3.msra.mxu0 %v434_v45 }
  0xf0   : > { %1292 = vmatprep.subr.mxu0 %v1519_v1 }
  0xf1   : > { %1293 = vmatpush3.msra.mxu0 %v441_v56 }
  0xf2   : > { %1294 = vmatprep.subr.mxu0 %v1519_v1  ;;  %v248_v1 = vld [vmem:[%s2043_s2] sm:$0xff] }
  0xf3   : > { %1295 = vmatpush3.msra.mxu0 %v448_v62 }
  0xf4   : > { %1297 = vmatmul.mubr.msk.f32.vlgmr.msra.gmra.mxu0 %vm229_vm1, %v1521_v44 }
 0x169   : > { %v487_v5 = vpop.f32.mrf.mxu1 }
 0x16b   : > { %v1193_v6 = vpop.f32.mrf.mxu1 }
 0x172   : > { %v336_v10 = vpop.f32.mrf.mxu0 }
 0x173   : > { %v337_v19 = vadd.f32 %v336_v10, %v248_v1 }
 0x174   : > { %v1158_v11 = vpop.f32.mrf.mxu0 }
 0x175   : > { %v488_v21 = vadd.f32 %v487_v5, %v337_v19 }
 0x189   : > { %v680_v12 = vpop.f32.mrf.mxu1 }
 0x18b   : > { %v1263_v16 = vpop.f32.mrf.mxu1 }
 0x193   : > { %v591_v17 = vpop.f32.mrf.mxu0 }
 0x194   : > { %v592_v23 = vadd.f32 %v591_v17, %v488_v21 }
 0x195   : > { %v1228_v18 = vpop.f32.mrf.mxu0 }
 0x196   : > { %v681_v24 = vadd.f32 %v680_v12, %v592_v23 }
 0x1ab   : > { %v886_v20 = vpop.f32.mrf.mxu1 }
 0x1ad   : > { %v1333_v22 = vpop.f32.mrf.mxu1 }
 0x1b4   : > { %v799_v25 = vpop.f32.mrf.mxu0 }
 0x1b5   : > { %v800_v26 = vadd.f32 %v799_v25, %v681_v24 }
 0x1b6   : > { %v1298_v27 = vpop.f32.mrf.mxu0 }
 0x1b7   : > { %v887_v28 = vadd.f32 %v886_v20, %v800_v26 }
 0x1b9   : > { %890 = vst [vmem:[%s211_s28] sm:$0xff] %v887_v28 }
 0x1ba   : > { %1446 = shalt.err (!%p1443_p3)
}
 0x1bb   : > { %s1447_s10 = scalar_lea.hbm %s904_s5, 128  ;;  %s1451_s19 = scalar_lea.hbm %s2044_s3, 256 }
 0x1bc   : > { %p1448_p5 = scmp.ne.s32.totalorder %s904_s5, %s1447_s10  ;;  %p1452_p9 = scmp.lt.s32.totalorder %s904_s5, %s2044_s3 }
 0x1bd   : > { %p1453_p12 = scmp.lt.s32.totalorder %s1451_s19, %s1447_s10 }
 0x1be   : > { %p1449_p6 = pnand %p1448_p5, %p1583_p4 }
 0x1bf   : > { %p1454_p10 = por %p1453_p12, %p1452_p9 }
 0x1c0   : > { %p1450_p7 = pneg %p1449_p6 }
 0x1c2   : > { %p1455_p11 = pnand %p1454_p10, %p1450_p7 }
 0x1c4   : > { %1458 = shalt.err (!%p1455_p11)
}
 0x1c5   : > { %1338 = dma.vmem_to_hbm [thread:$0]  (%p1583_p4), %s907_s29, 128, %s904_s5, %s892_s6  }
 0x1c6 PF: > { %p1350_p13 = scmp.ge.s32.totalorder %s1513_s17, 2  ;;  %s918_s26 = sand.u32 1, %s1493_s12  }
 0x1c7   : > { %s919_s27 = scalar_lea.sflag [#allocation4], %s918_s26 }
 0x1c8   : > { %p1345_p0 = pnand %p1350_p13, %p1590_p8 }
 0x1ca   : > { %p1346_p1 = pneg %p1345_p0 }
 0x1cc   : > { %1488 = dma.done.wait (%p1346_p1), %s919_s27, 128  }
 0x1cd   : > { %1490 = vsyncadd (%p1346_p1), %s919_s27, 4294967168  ;;  %s17_s17 = sadd.s32 1, %s1513_s17   ;;  %s2049_s12 = smov %s1497_s13 }
 0x1ce   : > { %p14_p2 = scmp.ge.s32.totalorder %s17_s17, 4   ;;  %s2050_s13 = smov %s1501_s14 }
 0x1cf   : > { %s2051_s14 = smov %s1596_s25  ;;  %s2052_s15 = smov %s1509_s16 }
 0x1d0   : > { %s2053_s16 = smov %s2055_s20  ;;  %16 = sbr.rel (!%p14_p2) target bundleno = 5 (0x5), region = 75 }
 0x1d5   :  { %924 = vsyncpa [#allocation3], 1 }
 0x1d6   :  { %926 = vsyncpa [#allocation3 + $0x1], 1 }
 0x1d7   :  { %927 = vsyncpa [#allocation4], 1 }
 0x1d8   :  { %929 = vsyncpa [#allocation4 + $0x1], 1 }

</bundles_post_ra>
